<compile_context>
chip_gen: v7x
topology: tpu7x:2x2x1
jax: 0.10.0
libtpu: 0.0.40
codegen_flags: <defaults>
</compile_context>

<pallas_src>
import functools

import jax
import jax.numpy as jnp
from jax.experimental import pallas as pl
from jax.experimental.pallas import tpu as pltpu


def _rcab_kernel(inv_hw,
                 xcol_ref, wc_ref, bc_ref, wd_ref, bd_ref, wu_ref, bu_ref,
                 o_ref):
    # xcol_ref: (9*Cin, HW)   im2col'd, channel-major slab for one image (pixels on lanes)
    # wc_ref:   (Cout, 9*Cin) flattened 3x3 conv weights; bc_ref: (Cout, 1)
    # wd_ref:   (Cred, Cout); bd_ref: (Cred, 1)
    # wu_ref:   (Cout, Cred); bu_ref: (Cout, 1)
    # o_ref:    (Cout, HW)
    y = jnp.dot(wc_ref[...], xcol_ref[...], preferred_element_type=jnp.float32)
    y = jnp.maximum(y + bc_ref[...], 0.0)                       # (Cout, HW)

    # global average pool (F.avg_pool2d(y, W) with H == W -> one value per channel)
    pooled = jnp.sum(y, axis=1, keepdims=True) * inv_hw         # (Cout, 1)

    # channel attention: 1x1 down -> sigmoid -> 1x1 up -> relu
    ca = jnp.dot(wd_ref[...], pooled, preferred_element_type=jnp.float32) + bd_ref[...]
    ca = jax.nn.sigmoid(ca)
    ca = jnp.dot(wu_ref[...], ca, preferred_element_type=jnp.float32) + bu_ref[...]
    ca = jnp.maximum(ca, 0.0)                                   # (Cout, 1)

    o_ref[...] = (y * ca).astype(o_ref.dtype)                   # broadcast over lanes


def rcab_forward(x_nchw, params):
    """Pallas RCAB forward. Input NCHW, output NCHW (matches the PyTorch module)."""
    N, Cin, H, W = x_nchw.shape
    w_conv, b_conv = params["w_conv"], params["b_conv"]
    w_down, b_down = params["w_down"], params["b_down"]
    w_up, b_up = params["w_up"], params["b_up"]
    Cout = w_conv.shape[0]
    Cred = w_down.shape[0]
    HW = H * W
    K = 9 * Cin

    # ---- layout glue (plain JAX): full im2col, channel-major, pixels on the last axis ----
    x = x_nchw.astype(jnp.float32)
    xp = jnp.pad(x, ((0, 0), (0, 0), (1, 1), (1, 1)))           # (N, Cin, H+2, W+2)
    cols = []
    for kh in range(3):
        for kw in range(3):
            cols.append(xp[:, :, kh:kh + H, kw:kw + W].reshape(N, Cin, HW))
    xcol = jnp.concatenate(cols, axis=1)                        # (N, 9*Cin, HW)

    # conv weight (Cout,Cin,3,3) -> (Cout,kh,kw,Cin) -> (Cout, 9*Cin); order matches xcol.
    wc = jnp.transpose(w_conv, (0, 2, 3, 1)).reshape(Cout, K).astype(jnp.float32)
    bc = b_conv.reshape(Cout, 1).astype(jnp.float32)
    wd = w_down.astype(jnp.float32)                             # (Cred, Cout)
    bd = b_down.reshape(Cred, 1).astype(jnp.float32)
    wu = w_up.astype(jnp.float32)                               # (Cout, Cred)
    bu = b_up.reshape(Cout, 1).astype(jnp.float32)

    kernel = functools.partial(_rcab_kernel, 1.0 / float(HW))
    out = pl.pallas_call(
        kernel,
        out_shape=jax.ShapeDtypeStruct((N, Cout, HW), jnp.float32),
        grid=(N,),
        in_specs=[
            pl.BlockSpec((None, K, HW), lambda b: (b, 0, 0)),    # per-image im2col slab
            pl.BlockSpec((Cout, K), lambda b: (0, 0)),           # conv taps (VMEM-resident)
            pl.BlockSpec((Cout, 1), lambda b: (0, 0)),
            pl.BlockSpec((Cred, Cout), lambda b: (0, 0)),
            pl.BlockSpec((Cred, 1), lambda b: (0, 0)),
            pl.BlockSpec((Cout, Cred), lambda b: (0, 0)),
            pl.BlockSpec((Cout, 1), lambda b: (0, 0)),
        ],
        out_specs=pl.BlockSpec((None, Cout, HW), lambda b: (b, 0, 0)),
        compiler_params=pltpu.CompilerParams(dimension_semantics=("parallel",)),
    )(xcol, wc, bc, wd, bd, wu, bu)

    return out.reshape(N, Cout, H, W)                           # already channel-major NCHW


def rcab_ref(x_nchw, params):
    """Pure-JAX reference matching the PyTorch forward (for verification)."""
    w_conv, b_conv = params["w_conv"], params["b_conv"]
    w_down, b_down = params["w_down"], params["b_down"]
    w_up, b_up = params["w_up"], params["b_up"]
    y = jax.lax.conv_general_dilated(
        x_nchw.astype(jnp.float32), w_conv, window_strides=(1, 1),
        padding=((1, 1), (1, 1)), dimension_numbers=("NCHW", "OIHW", "NCHW"),
        precision=jax.lax.Precision.HIGHEST)
    y = jnp.maximum(y + b_conv[None, :, None, None], 0.0)
    pooled = jnp.mean(y, axis=(2, 3))                           # avg_pool2d(y, W) with H == W
    ca = pooled @ w_down.T + b_down
    ca = jax.nn.sigmoid(ca)
    ca = ca @ w_up.T + b_up
    ca = jnp.maximum(ca, 0.0)
    return y * ca[:, :, None, None]


if __name__ == "__main__":
    # RCAB(inChannel=4, growthRate=8, layerDepth=3, reductRateCa=2); layerDepth unused in forward.
    N, Cin, H, W = 2, 4, 16, 16
    growthRate, reductRateCa = 8, 2
    Cout, Cred = growthRate, growthRate // reductRateCa

    key = jax.random.PRNGKey(0)
    ks = jax.random.split(key, 7)
    params = {
        "w_conv": 0.1 * jax.random.normal(ks[0], (Cout, Cin, 3, 3), jnp.float32),
        "b_conv": 0.1 * jax.random.normal(ks[1], (Cout,), jnp.float32),
        "w_down": 0.1 * jax.random.normal(ks[2], (Cred, Cout), jnp.float32),
        "b_down": 0.1 * jax.random.normal(ks[3], (Cred,), jnp.float32),
        "w_up":   0.1 * jax.random.normal(ks[4], (Cout, Cred), jnp.float32),
        "b_up":   0.1 * jax.random.normal(ks[5], (Cout,), jnp.float32),
    }
    x = jax.random.normal(ks[6], (N, Cin, H, W), jnp.float32)

    out = jax.block_until_ready(rcab_forward(x, params))
    ref = jax.block_until_ready(rcab_ref(x, params))

    assert out.shape == (N, Cout, H, W), out.shape
    if not jnp.allclose(out, ref, rtol=5e-2, atol=5e-2):
        raise AssertionError(
            f"kernel/reference mismatch, max abs diff = {float(jnp.max(jnp.abs(out - ref)))}")
    print("KERNEL_OK")
</pallas_src>

<mosaic_0001>
module attributes {stable_mosaic.version = 11 : i64} {
  func.func @_rcab_kernel(%arg0: i32, %arg1: memref<1x36x256xf32, #tpu.memory_space<vmem>>, %arg2: memref<8x36xf32, #tpu.memory_space<vmem>>, %arg3: memref<8x1xf32, #tpu.memory_space<vmem>>, %arg4: memref<4x8xf32, #tpu.memory_space<vmem>>, %arg5: memref<4x1xf32, #tpu.memory_space<vmem>>, %arg6: memref<8x4xf32, #tpu.memory_space<vmem>>, %arg7: memref<8x1xf32, #tpu.memory_space<vmem>>, %arg8: memref<1x8x256xf32, #tpu.memory_space<vmem>>) attributes {dimension_semantics = [#tpu.dimension_semantics<parallel>], iteration_bounds = array<i64: 2>, scalar_prefetch = 0 : i64, scratch_operands = 0 : i64, tpu.core_type = #tpu.core_type<tc>, window_params = [{transform_indices = @transform_0, window_bounds = array<i64: 1, 36, 256>}, {pipeline_mode = #tpu.pipeline_mode<synchronous>, transform_indices = @transform_1, window_bounds = array<i64: 8, 36>}, {pipeline_mode = #tpu.pipeline_mode<synchronous>, transform_indices = @transform_2, window_bounds = array<i64: 8, 1>}, {pipeline_mode = #tpu.pipeline_mode<synchronous>, transform_indices = @transform_3, window_bounds = array<i64: 4, 8>}, {pipeline_mode = #tpu.pipeline_mode<synchronous>, transform_indices = @transform_4, window_bounds = array<i64: 4, 1>}, {pipeline_mode = #tpu.pipeline_mode<synchronous>, transform_indices = @transform_5, window_bounds = array<i64: 8, 4>}, {pipeline_mode = #tpu.pipeline_mode<synchronous>, transform_indices = @transform_6, window_bounds = array<i64: 8, 1>}, {transform_indices = @transform_7, window_bounds = array<i64: 1, 8, 256>}]} {
    %c0 = arith.constant 0 : index
    %c0_0 = arith.constant 0 : index
    %0 = vector.load %arg2[%c0, %c0_0] : memref<8x36xf32, #tpu.memory_space<vmem>>, vector<8x36xf32>
    %c0_1 = arith.constant 0 : index
    %c0_2 = arith.constant 0 : index
    %c0_3 = arith.constant 0 : index
    %1 = vector.load %arg1[%c0_1, %c0_2, %c0_3] : memref<1x36x256xf32, #tpu.memory_space<vmem>>, vector<1x36x256xf32>
    %2 = vector.shape_cast %1 : vector<1x36x256xf32> to vector<36x256xf32>
    %cst = arith.constant dense<0.000000e+00> : vector<8x256xf32>
    %3 = tpu.matmul %0, %2, %cst {dimension_numbers = #tpu.dot_dimension_numbers<[1], [0], [0], [1], [0, 0, 1, 1], [], []>} : vector<8x36xf32>, vector<36x256xf32>, vector<8x256xf32> -> vector<8x256xf32>
    %c0_4 = arith.constant 0 : index
    %c0_5 = arith.constant 0 : index
    %4 = vector.load %arg3[%c0_4, %c0_5] : memref<8x1xf32, #tpu.memory_space<vmem>>, vector<8x1xf32>
    %5 = vector.broadcast %4 : vector<8x1xf32> to vector<8x256xf32>
    %6 = arith.addf %3, %5 : vector<8x256xf32>
    %cst_6 = arith.constant 0.000000e+00 : f32
    %7 = vector.broadcast %cst_6 : f32 to vector<8x256xf32>
    %8 = arith.maximumf %6, %7 : vector<8x256xf32>
    %cst_7 = arith.constant dense<0.000000e+00> : vector<8xf32>
    %9 = vector.multi_reduction <add>, %8, %cst_7 [1] : vector<8x256xf32> to vector<8xf32>
    %10 = vector.shape_cast %9 : vector<8xf32> to vector<8x1xf32>
    %cst_8 = arith.constant 3.906250e-03 : f32
    %11 = vector.broadcast %cst_8 : f32 to vector<8x1xf32>
    %12 = arith.mulf %10, %11 : vector<8x1xf32>
    %c0_9 = arith.constant 0 : index
    %c0_10 = arith.constant 0 : index
    %13 = vector.load %arg4[%c0_9, %c0_10] : memref<4x8xf32, #tpu.memory_space<vmem>>, vector<4x8xf32>
    %cst_11 = arith.constant dense<0.000000e+00> : vector<4x1xf32>
    %14 = tpu.matmul %13, %12, %cst_11 {dimension_numbers = #tpu.dot_dimension_numbers<[1], [0], [0], [1], [0, 0, 1, 1], [], []>} : vector<4x8xf32>, vector<8x1xf32>, vector<4x1xf32> -> vector<4x1xf32>
    %c0_12 = arith.constant 0 : index
    %c0_13 = arith.constant 0 : index
    %15 = vector.load %arg5[%c0_12, %c0_13] : memref<4x1xf32, #tpu.memory_space<vmem>>, vector<4x1xf32>
    %16 = arith.addf %14, %15 : vector<4x1xf32>
    %17 = arith.negf %16 : vector<4x1xf32>
    %18 = math.exp %17 : vector<4x1xf32>
    %cst_14 = arith.constant 1.000000e+00 : f32
    %19 = vector.broadcast %cst_14 : f32 to vector<4x1xf32>
    %20 = arith.addf %19, %18 : vector<4x1xf32>
    %21 = arith.divf %19, %20 : vector<4x1xf32>
    %c0_15 = arith.constant 0 : index
    %c0_16 = arith.constant 0 : index
    %22 = vector.load %arg6[%c0_15, %c0_16] : memref<8x4xf32, #tpu.memory_space<vmem>>, vector<8x4xf32>
    %cst_17 = arith.constant dense<0.000000e+00> : vector<8x1xf32>
    %23 = tpu.matmul %22, %21, %cst_17 {dimension_numbers = #tpu.dot_dimension_numbers<[1], [0], [0], [1], [0, 0, 1, 1], [], []>} : vector<8x4xf32>, vector<4x1xf32>, vector<8x1xf32> -> vector<8x1xf32>
    %c0_18 = arith.constant 0 : index
    %c0_19 = arith.constant 0 : index
    %24 = vector.load %arg7[%c0_18, %c0_19] : memref<8x1xf32, #tpu.memory_space<vmem>>, vector<8x1xf32>
    %25 = arith.addf %23, %24 : vector<8x1xf32>
    %cst_20 = arith.constant 0.000000e+00 : f32
    %26 = vector.broadcast %cst_20 : f32 to vector<8x1xf32>
    %27 = arith.maximumf %25, %26 : vector<8x1xf32>
    %28 = vector.broadcast %27 : vector<8x1xf32> to vector<8x256xf32>
    %29 = arith.mulf %8, %28 : vector<8x256xf32>
    %c0_21 = arith.constant 0 : index
    %c0_22 = arith.constant 0 : index
    %c0_23 = arith.constant 0 : index
    %30 = vector.load %arg8[%c0_21, %c0_22, %c0_23] : memref<1x8x256xf32, #tpu.memory_space<vmem>>, vector<1x8x256xf32>
    %31 = vector.shape_cast %30 : vector<1x8x256xf32> to vector<8x256xf32>
    %32 = vector.shape_cast %29 : vector<8x256xf32> to vector<1x8x256xf32>
    tpu.vector_store %arg8[%c0_21, %c0_22, %c0_23], %32 {strides = array<i32>} : memref<1x8x256xf32, #tpu.memory_space<vmem>>, vector<1x8x256xf32>,
    return
  }
  func.func @transform_0(%arg0: i32) -> (i32, i32, i32) {
    %c0_i32 = arith.constant 0 : i32
    %c0_i32_0 = arith.constant 0 : i32
    %c0_i32_1 = arith.constant 0 : i32
    return %arg0, %c0_i32, %c0_i32_0 : i32, i32, i32
  }
  func.func @transform_1(%arg0: i32) -> (i32, i32) {
    %c0_i32 = arith.constant 0 : i32
    %c0_i32_0 = arith.constant 0 : i32
    %c0_i32_1 = arith.constant 0 : i32
    return %c0_i32, %c0_i32_0 : i32, i32
  }
  func.func @transform_2(%arg0: i32) -> (i32, i32) {
    %c0_i32 = arith.constant 0 : i32
    %c0_i32_0 = arith.constant 0 : i32
    %c0_i32_1 = arith.constant 0 : i32
    return %c0_i32, %c0_i32_0 : i32, i32
  }
  func.func @transform_3(%arg0: i32) -> (i32, i32) {
    %c0_i32 = arith.constant 0 : i32
    %c0_i32_0 = arith.constant 0 : i32
    %c0_i32_1 = arith.constant 0 : i32
    return %c0_i32, %c0_i32_0 : i32, i32
  }
  func.func @transform_4(%arg0: i32) -> (i32, i32) {
    %c0_i32 = arith.constant 0 : i32
    %c0_i32_0 = arith.constant 0 : i32
    %c0_i32_1 = arith.constant 0 : i32
    return %c0_i32, %c0_i32_0 : i32, i32
  }
  func.func @transform_5(%arg0: i32) -> (i32, i32) {
    %c0_i32 = arith.constant 0 : i32
    %c0_i32_0 = arith.constant 0 : i32
    %c0_i32_1 = arith.constant 0 : i32
    return %c0_i32, %c0_i32_0 : i32, i32
  }
  func.func @transform_6(%arg0: i32) -> (i32, i32) {
    %c0_i32 = arith.constant 0 : i32
    %c0_i32_0 = arith.constant 0 : i32
    %c0_i32_1 = arith.constant 0 : i32
    return %c0_i32, %c0_i32_0 : i32, i32
  }
  func.func @transform_7(%arg0: i32) -> (i32, i32, i32) {
    %c0_i32 = arith.constant 0 : i32
    %c0_i32_0 = arith.constant 0 : i32
    %c0_i32_1 = arith.constant 0 : i32
    return %arg0, %c0_i32, %c0_i32_0 : i32, i32, i32
  }
}

</mosaic_0001>

<bundles_post_ra>
// kernel: tpu_custom_call.1
= control target key start
LH: loop header
LB: loop body
LE: loop exit
PB: predicated region body
PF: predicated region fallthrough
CT: control target
= control target key end

     0   :  { %12 = vsyncpa [#allocation3], 0  ;;  %s946_s0 = inlined_call_operand.vmem [shape: f32[2,36,256], index: 0, kind: input, shape index: {}]   ;;  %s947_s1 = inlined_call_operand.vmem [shape: f32[8,36], index: 1, kind: input, shape index: {}]   ;;  %s948_s2 = inlined_call_operand.vmem [shape: f32[8,1], index: 2, kind: input, shape index: {}]   ;;  %s949_s3 = inlined_call_operand.vmem [shape: f32[4,8], index: 3, kind: input, shape index: {}]   ;;  %s950_s4 = inlined_call_operand.vmem [shape: f32[4,1], index: 4, kind: input, shape index: {}]   ;;  %s951_s5 = inlined_call_operand.vmem [shape: f32[8,4], index: 5, kind: input, shape index: {}]   ;;  %s952_s6 = inlined_call_operand.vmem [shape: f32[8,1], index: 6, kind: input, shape index: {}]   ;;  %s953_s7 = inlined_call_operand.hbm [shape: f32[2,8,256], index: 7, kind: output, shape index: {}]  }
   0x1   :  { %14 = vsyncpa [#allocation3 + $0x1], 0  ;;  %s825_s24 = smov 0   ;;  %s827_s25 = smov 0  }
   0x2   :  { %s829_s26 = smov 0   ;;  %s831_s27 = smov 0  }
   0x3 LB: > { %s846_s28 = sadd.s32 4294967295, %s779_s27   ;;  %s627_s29 = sadd.s32 4294967294, %s779_s27   ;;  %s779_s27 = sphi %s831_s27, %s959_s27   ;;  %s775_s26 = sphi %s829_s26, %s958_s26   ;;  %s771_s25 = sphi %s827_s25, %s957_s25   ;;  %s767_s24 = sphi %s825_s24, %s956_s24  }
   0x4   : > { %s850_s30 = sadd.s32 1, %s779_s27   ;;  %s179_s8 = sadd.s32 1, %s775_s26 }
   0x5   : > { %s176_s9 = ssub.s32 %s779_s27, %s850_s30  ;;  %p189_p0 = scmp.ne.s32.totalorder %s775_s26, %s771_s25 }
   0x6   : > { %p177_p1 = scmp.eq.s32.totalorder %s176_s9, 0  ;;  %p190_p2 = scmp.eq.s32.totalorder %s846_s28, 1 }
   0x7   : > { %p195_p3 = scmp.ne.s32.totalorder %s771_s25, %s767_s24  ;;  %p196_p4 = scmp.eq.s32.totalorder %s627_s29, 1 }
   0x8   : > { %s861_s10 = scalar_select %p177_p1, %s775_s26, %s179_s8  }
   0x9   : > { %p863_p5 = por %p190_p2, %p189_p0  ;;  %p867_p6 = por %p196_p4, %p195_p3 }
   0xa   : > { %p630_p7 = scmp.ge.s32.totalorder %s779_s27, 1  ;;  %p240_p8 = scmp.lt.s32.totalorder %s779_s27, 3 }
   0xc   : > { %p241_p9 = pnand %p630_p7, %p240_p8 }
   0xd   : > { %p272_p10 = scmp.lt.s32.totalorder (!%p241_p9), %s846_s28, 1  ;;  %v781_v0 = vmov (!%p241_p9), 0.0   ;;  %v782_v1 = vmov (!%p241_p9), 0   ;;  %v288_v2 = vld [vmem:[%s948_s2] sm:$0xff] (!%p241_p9)  ;;  %vm298_vm0 = vcmask (!%p241_p9), 1043456   ;;  %vm294_vm1 = vcmask (!%p241_p9), 293888  }
   0xe   : > { %244 = sbr.rel (%p241_p9) target bundleno = 1004 (0x3ec), region = 48  ;;  %369 = vmatprep.mubr.f32.mxu0 (!%p241_p9), %v781_v0  ;;  %711 = vset.pattern.permute.xlu0 (!%p241_p9), %v782_v1  ;;  %v277_v17 = vld [vmem:[%s947_s1] sm:$0xff] (!%p241_p9)  ;;  %vm783_vm2 = vmmov (!%p241_p9), 0   ;;  %vm384_vm3 = vcmask (!%p241_p9), 64512   ;;  %vm466_vm4 = vcmask (!%p241_p9), 31744   ;;  %s645_s18 = sshll.u32 (!%p241_p9), %s846_s28, 8 }
   0xf   : > { %291 = vperm.xlu0 (!%p241_p9), %711, %v288_v2   ;;  %650 = vmatprep.subr.mxu1 (!%p241_p9), %v781_v0  ;;  %v382_v28 = vld [vmem:[%s949_s3] sm:$0xf] (!%p241_p9)  ;;  %s904_s23 = scalar_lea.hbm (!%p241_p9), %s953_s7, %s645_s18 }
  0x10   : > { %712 = vset.pattern.permute.xlu1 (!%p241_p9), %v782_v1  ;;  %652 = vmatprep.mubr.msk.f32.mxu1 (!%p241_p9), %vm783_vm2, %v781_v0  ;;  %v383_v29 = vld [vmem:[%s950_s4] sm:$0xf] (!%p241_p9) }
  0x11   : > { %v464_v36 = vld [vmem:[%s951_s5] sm:$0xff] (!%p241_p9) }
  0x12   : > { %v465_v38 = vld [vmem:[%s952_s6] sm:$0xff] (!%p241_p9) }
  0x15   : > { %s273_s15 = scalar_select %p272_p10, %s846_s28, 1 }
  0x16   : > { %s784_s28 = smov [#allocation2]  }
  0x17   : > { %s668_s16 = smul.u32 80, %s273_s15  ;;  %s721_s9 = sshll.u32 %s784_s28, 4  ;;  %s722_s9 = int_to_ptr.vmem [resolvable:$false] %s721_s9 }
  0x18   : > { %s723_s13 = scalar_lea.vmem %s722_s9, 512 }
  0x19   : > { %s276_s19 = scalar_lea.vmem %s946_s0, %s668_s16  ;;  %s269_s16 = sand.u32 1, %s771_s25  }
  0x1a   : > { %v279_v3 = vld [vmem:[%s276_s19 + $0x8] sm:$0xff]  ;;  %v281_v4 = vld [vmem:[%s276_s19 + $0x18] sm:$0xff]  ;;  %v278_v5 = vld [vmem:[%s276_s19] sm:$0xff]  ;;  %s631_s17 = sshll.u32 %s269_s16, 4  ;;  %s554_s29 = scalar_lea.sflag [#allocation3], %s269_s16 }
  0x1b   : > { %v660_v6 = vpack.c.bf16 %v281_v4, %v279_v3  ;;  %v280_v7 = vld [vmem:[%s276_s19 + $0x10] sm:$0xff]  ;;  %v283_v8 = vld [vmem:[%s276_s19 + $0x28] sm:$0xff]  ;;  %v285_v9 = vld [vmem:[%s276_s19 + $0x38] sm:$0xff] }
  0x1c   : > { %v662_v10 = vpack.c.bf16 %v280_v7, %v278_v5  ;;  %v664_v11 = vpack.c.bf16 %v285_v9, %v283_v8  ;;  %v282_v12 = vld [vmem:[%s276_s19 + $0x20] sm:$0xff]  ;;  %v284_v13 = vld [vmem:[%s276_s19 + $0x30] sm:$0xff]  ;;  %v287_v15 = vld [vmem:[%s276_s19 + $0x48] sm:$0xf] }
  0x1d   : > { %661 = vmatprep.subr.bf16.mxu0 %v660_v6  ;;  %v666_v14 = vpack.c.bf16 %v284_v13, %v282_v12  ;;  %v286_v16 = vld [vmem:[%s276_s19 + $0x40] sm:$0xf]  ;;  %s271_s19 = scalar_lea.vmem [#allocation2], %s631_s17 }
  0x1e   : > { %663 = vmatpush1.bf16.msra.mxu0 %v662_v10  ;;  %s568_s20 = sshll.u32 %s271_s19, 4  ;;  %s906_s20 = int_to_ptr.vmem [resolvable:$true] %s568_s20 }
  0x1f   : > { %665 = vmatprep.subr.bf16.mxu0 %v664_v11  ;;  %s717_s8 = scalar_lea.vmem %s906_s20, 256  ;;  %p724_p0 = scmp.lt.s32.totalorder %s906_s20, %s722_s9 }
  0x20   : > { %p718_p11 = scmp.ne.s32.totalorder %s906_s20, %s717_s8  ;;  %p725_p1 = scmp.lt.s32.totalorder %s723_s13, %s717_s8 }
  0x22   : > { %667 = vmatpush1.bf16.msra.mxu0 %v666_v14  ;;  %p719_p12 = pnand %p718_p11, %p863_p5  ;;  %p726_p2 = por %p725_p1, %p724_p0 }
  0x23   : > { %633 = vmatprep.subr.msk.mxu0 %vm298_vm0, %v287_v15 }
  0x24   : > { %p720_p13 = pneg %p719_p12 }
  0x26   : > { %634 = vmatpush1.msk.msra.mxu0 %vm298_vm0, %v286_v16  ;;  %p727_p3 = pnand %p726_p2, %p720_p13 }
  0x27   : > { %635 = vmatmul.mubr.msk.f32.vlgmr.msra.gmra.mrb[0].mxu0 %vm294_vm1, %v277_v17 }
  0x8e   : > { %v292_v18 = vpop.permute.xlu0 %291 }
  0xfa   : > { %v371_v19 = vpop.f32.mrb[0].mxu0 }
  0xfb   : > { %v372_v20 = vadd.f32 %v371_v19, %v292_v18  ;;  %v373_v21 = vpop.f32.mrb[1].mxu0 }
  0xfc   : > { %v374_v22 = vadd.f32 %v373_v21, %v292_v18 }
  0xfd   : > { %v376_v23 = vmax.f32 %v372_v20, 0.0 }
  0xfe   : > { %v377_v24 = vmax.f32 %v374_v22, 0.0 }
 0x100   : > { %v378_v25 = vadd.f32 %v377_v24, %v376_v23 }
 0x102   : > { %379 = vadd.xlane.f32.xlu0 %v378_v25 }
 0x18f   : > { %v380_v26 = vpop.xlane.xlu0 %379 }
 0x190   : > { %v381_v27 = vmul.f32 0.00390625, %v380_v26 }
 0x192   : > { %651 = vmatpush3.msra.mxu1 %v381_v27 }
 0x193   : > { %653 = vmatmul.mubr.msk.f32.vlgmr.msra.gmra.mrb[0].mxu1 %vm384_vm3, %v382_v28  ;;  %655 = vmatprep.subr.mxu1 %v781_v0 }
 0x194   : > { %657 = vmatprep.mubr.msk.f32.mxu1 %vm783_vm2, %v781_v0 }
 0x266   : > { %v454_v30 = vpop.f32.mrb[0].mxu1 }
 0x267   : > { %v455_v31 = vadd.f32 %v454_v30, %v383_v29  ;;  %v654_v32 = vpop.f32.mrb[1].mxu1 }
 0x269   : > { %v637_v33 = vmul.f32 -1.442695, %v455_v31 }
 0x26b   : > { %713 = vpow2.f32 %v637_v33 }
 0x275   : > { %v714_v34 = vpop.eup %713 }
 0x276   : > { %v461_v35 = vadd.f32 1.0, %v714_v34 }
 0x278   : > { %715 = vrcp.f32 %v461_v35 }
 0x282   : > { %v716_v37 = vpop.eup %715 }
 0x283   : > { %656 = vmatpush3.msk.msra.mxu1 %vm298_vm0, %v716_v37 }
 0x284   : > { %658 = vmatmul.mubr.msk.f32.vlgmr.msra.gmra.mrb[2].mxu1 %vm466_vm4, %v464_v36 }
 0x357   : > { %v539_v39 = vpop.f32.mrb[2].mxu1 }
 0x358   : > { %v540_v40 = vadd.f32 %v539_v39, %v465_v38  ;;  %v659_v41 = vpop.f32.mrb[3].mxu1 }
 0x35a   : > { %v543_v42 = vmax.f32 %v540_v40, 0.0 }
 0x35c   : > { %546 = vperm.xlu1 %712, %v543_v42  }
 0x3db   : > { %v547_v43 = vpop.permute.xlu1 %546 }
 0x3dc   : > { %v549_v44 = vmul.f32 %v547_v43, %v376_v23  ;;  %v550_v45 = vmul.f32 %v547_v43, %v377_v24 }
 0x3de   : > { %551 = vst [vmem:[%s271_s19] sm:$0xff] %v549_v44  ;;  %552 = vst [vmem:[%s271_s19 + $0x8] sm:$0xff] %v550_v45 }
 0x3df   : > { %730 = shalt.err (!%p727_p3)
}
 0x3e0   : > { %s731_s14 = scalar_lea.hbm %s904_s23, 256  ;;  %s735_s17 = scalar_lea.hbm %s953_s7, 512 }
 0x3e1   : > { %p732_p4 = scmp.ne.s32.totalorder %s904_s23, %s731_s14  ;;  %p736_p9 = scmp.lt.u32.totalorder %s904_s23, %s953_s7 }
 0x3e2   : > { %p737_p10 = scmp.lt.u32.totalorder %s735_s17, %s731_s14  ;;  %p739_p12 = scmp.lt.u32.totalorder %s731_s14, %s904_s23 }
 0x3e3   : > { %p733_p7 = pnand %p732_p4, %p863_p5 }
 0x3e4   : > { %p738_p11 = por %p737_p10, %p736_p9 }
 0x3e5   : > { %p734_p8 = pneg %p733_p7 }
 0x3e6   : > { %p740_p13 = por %p739_p12, %p738_p11 }
 0x3e8   : > { %p741_p0 = pnand %p740_p13, %p734_p8 }
 0x3ea   : > { %744 = shalt.err (!%p741_p0)
}
 0x3eb   : > { %669 = dma.vmem_to_hbm [thread:$0]  (%p863_p5), %s906_s20, 256, %s904_s23, %s554_s29  }
 0x3ec PF: > { %p675_p1 = scmp.ge.s32.totalorder %s779_s27, 2  ;;  %s580_s21 = sand.u32 1, %s767_s24  }
 0x3ed   : > { %s581_s22 = scalar_lea.sflag [#allocation3], %s580_s21 }
 0x3ee   : > { %p672_p2 = pnand %p675_p1, %p867_p6 }
 0x3f0   : > { %762 = dma.done.wait (!%p672_p2), %s581_s22, 256  }
 0x3f1   : > { %764 = vsyncadd (!%p672_p2), %s581_s22, 4294967040  ;;  %p17_p3 = scmp.ge.s32.totalorder %s850_s30, 4   ;;  %s956_s24 = smov %s771_s25 }
 0x3f2   : > { %s957_s25 = smov %s775_s26  ;;  %s958_s26 = smov %s861_s10 }
 0x3f3   : > { %s959_s27 = smov %s850_s30  ;;  %19 = sbr.rel (!%p17_p3) target bundleno = 3 (0x3), region = 83 }
 0x3fa   :  { %586 = vsyncpa [#allocation3], 1 }
 0x3fb   :  { %588 = vsyncpa [#allocation3 + $0x1], 1 }

</bundles_post_ra>
